<compile_context>
chip_gen: v5e
topology: v5e:2x2
jax: 0.10.0
libtpu: 0.0.40
codegen_flags: <defaults>
</compile_context>

<pallas_src>
import functools
import math

import jax
import jax.numpy as jnp
from jax.experimental import pallas as pl
from jax.experimental.pallas import tpu as pltpu

LN_EPS = 1e-5  # torch.nn.LayerNorm default


def _round_up(x, m):
    return ((x + m - 1) // m) * m


def _mlp_kernel(x_ref, w_ref, b_ref, g_ref, beta_ref, o_ref, acc_ref, *, d_out):
    """One (batch-tile, k-tile) grid step."""
    k = pl.program_id(1)

    @pl.when(k == 0)
    def _():
        acc_ref[...] = jnp.zeros_like(acc_ref)

    # Partial matmul on the MXU: bf16 x bf16 -> f32 accumulate.
    acc_ref[...] += jnp.dot(x_ref[...], w_ref[...],
                            preferred_element_type=jnp.float32)

    @pl.when(k == pl.num_programs(1) - 1)
    def _():
        y = acc_ref[...] + b_ref[...]
        d_out_p = y.shape[-1]
        if d_out_p == d_out:
            # No lane padding: plain row reductions.
            mean = jnp.mean(y, axis=-1, keepdims=True)
            centered = y - mean
            var = jnp.mean(centered * centered, axis=-1, keepdims=True)
        else:
            # D_out was padded to a multiple of 128: mask padded lanes out of
            # the LayerNorm statistics (biased variance, like torch).
            col = jax.lax.broadcasted_iota(jnp.int32, y.shape, 1)
            mask = col < d_out
            inv_n = 1.0 / d_out
            mean = jnp.sum(jnp.where(mask, y, 0.0), axis=-1, keepdims=True) * inv_n
            centered = jnp.where(mask, y - mean, 0.0)
            var = jnp.sum(centered * centered, axis=-1, keepdims=True) * inv_n
        y = centered * jax.lax.rsqrt(var + LN_EPS)
        y = y * g_ref[...] + beta_ref[...]
        o_ref[...] = jnp.maximum(y, 0.0).astype(o_ref.dtype)


def mlp_forward(x, w, b, gamma, beta, *, block_b=256, block_k=512):
    orig_shape = x.shape
    d_in = orig_shape[-1]
    d_out = w.shape[1]
    assert w.shape[0] == d_in

    # nn.Linear / LayerNorm act on the last dim only: flatten leading dims.
    x2 = x.reshape(-1, d_in)
    batch = x2.shape[0]

    # --- Tile sizing --------------------------------------------------------
    block_k = min(block_k, _round_up(d_in, 128))   # multiple of 128 (MXU K)
    d_in_p = _round_up(d_in, block_k)
    d_out_p = _round_up(d_out, 128)                # lane-dense output stores
    block_b = min(block_b, _round_up(batch, 16))   # multiple of 16 (bf16 rows)
    batch_p = _round_up(batch, block_b)

    # --- Pad + cast operands (bf16 MXU inputs, f32 everything else) ---------
    x_p = jnp.zeros((batch_p, d_in_p), jnp.bfloat16)
    x_p = x_p.at[:batch, :d_in].set(x2.astype(jnp.bfloat16))
    w_p = jnp.zeros((d_in_p, d_out_p), jnp.bfloat16)
    w_p = w_p.at[:d_in, :d_out].set(w.astype(jnp.bfloat16))

    def pad_vec(v):
        v2 = jnp.zeros((1, d_out_p), jnp.float32)
        return v2.at[0, :d_out].set(v.astype(jnp.float32))

    b2, g2, beta2 = pad_vec(b), pad_vec(gamma), pad_vec(beta)

    grid = (batch_p // block_b, d_in_p // block_k)

    # --- VMEM budget (double-buffered inputs/outputs + f32 accumulator) -----
    tile_bytes = (
        2 * block_b * block_k * 2        # x tile      (bf16, 2 buffers)
        + 2 * block_k * d_out_p * 2      # w tile      (bf16, 2 buffers)
        + 2 * 3 * d_out_p * 4            # bias/gamma/beta (2 buffers each)
        + 2 * block_b * d_out_p * 4      # out tile    (f32, 2 buffers)
        + block_b * d_out_p * 4          # accumulator scratch
    )
    vmem_limit_bytes = min(64 * 2**20, max(32 * 2**20, 2 * tile_bytes))

    cost = pl.CostEstimate(
        flops=2 * batch_p * d_in_p * d_out_p,
        transcendentals=batch_p,  # one rsqrt per row
        bytes_accessed=(x_p.size * 2 + w_p.size * 2
                        + 3 * d_out_p * 4 + batch_p * d_out_p * 4),
    )

    kernel = functools.partial(_mlp_kernel, d_out=d_out)

    out = pl.pallas_call(
        kernel,
        out_shape=jax.ShapeDtypeStruct((batch_p, d_out_p), jnp.float32),
        grid_spec=pltpu.PrefetchScalarGridSpec(
            num_scalar_prefetch=0,
            grid=grid,
            in_specs=[
                pl.BlockSpec((block_b, block_k), lambda i, k: (i, k)),   # x
                pl.BlockSpec((block_k, d_out_p), lambda i, k: (k, 0)),   # w
                pl.BlockSpec((1, d_out_p), lambda i, k: (0, 0)),         # bias
                pl.BlockSpec((1, d_out_p), lambda i, k: (0, 0)),         # gamma
                pl.BlockSpec((1, d_out_p), lambda i, k: (0, 0)),         # beta
            ],
            out_specs=pl.BlockSpec((block_b, d_out_p), lambda i, k: (i, 0)),
            scratch_shapes=[pltpu.VMEM((block_b, d_out_p), jnp.float32)],
        ),
        compiler_params=pltpu.CompilerParams(
            dimension_semantics=("parallel", "arbitrary"),
            vmem_limit_bytes=vmem_limit_bytes,
        ),
        cost_estimate=cost,
    )(x_p, w_p, b2, g2, beta2)

    out = out[:batch, :d_out]
    return out.reshape(*orig_shape[:-1], d_out)


def reference_forward(x, w, b, gamma, beta, *, matmul_dtype=jnp.float32):
    y = jnp.dot(x.astype(matmul_dtype), w.astype(matmul_dtype),
                preferred_element_type=jnp.float32) + b
    mean = jnp.mean(y, axis=-1, keepdims=True)
    var = jnp.mean((y - mean) ** 2, axis=-1, keepdims=True)
    y = (y - mean) / jnp.sqrt(var + LN_EPS)
    y = y * gamma + beta
    return jnp.maximum(y, 0.0)


if __name__ == "__main__":
    # Small shapes consistent with the module: batch=8, input_dims=64, output_dims=128.
    B, D_in, D_out = 8, 64, 128

    key = jax.random.PRNGKey(0)
    kx, kw = jax.random.split(key)

    # Parameter init matching the module: xavier_uniform_ weight, zero bias,
    # LayerNorm gamma=1 / beta=0.
    bound = math.sqrt(6.0 / (D_in + D_out))
    w = jax.random.uniform(kw, (D_in, D_out), jnp.float32, -bound, bound)
    b = jnp.zeros((D_out,), jnp.float32)
    gamma = jnp.ones((D_out,), jnp.float32)
    beta = jnp.zeros((D_out,), jnp.float32)

    x = jax.random.normal(kx, (B, D_in), jnp.float32)

    out = jax.block_until_ready(mlp_forward(x, w, b, gamma, beta))
    assert out.shape == (B, D_out)

    # Logic check vs a reference with the same numerics (bf16 matmul, f32 LN).
    ref_bf16 = reference_forward(x, w, b, gamma, beta, matmul_dtype=jnp.bfloat16)
    assert jnp.allclose(out, ref_bf16, atol=2e-3, rtol=2e-3), "mismatch vs bf16 reference"

    # Sanity check vs the full-f32 module semantics (loose tol for bf16 MXU inputs).
    ref_f32 = reference_forward(x, w, b, gamma, beta)
    assert jnp.allclose(out, ref_f32, atol=3e-2, rtol=3e-2), "mismatch vs f32 reference"

    print("KERNEL_OK")
</pallas_src>

<mosaic_0001>
module attributes {stable_mosaic.version = 11 : i64} {
  func.func @_mlp_kernel(%arg0: i32, %arg1: i32, %arg2: memref<16x128xbf16, #tpu.memory_space<vmem>>, %arg3: memref<128x128xbf16, #tpu.memory_space<vmem>>, %arg4: memref<1x128xf32, #tpu.memory_space<vmem>>, %arg5: memref<1x128xf32, #tpu.memory_space<vmem>>, %arg6: memref<1x128xf32, #tpu.memory_space<vmem>>, %arg7: memref<16x128xf32, #tpu.memory_space<vmem>>, %arg8: memref<16x128xf32, #tpu.memory_space<vmem>>) attributes {dimension_semantics = [#tpu.dimension_semantics<parallel>, #tpu.dimension_semantics<arbitrary>], iteration_bounds = array<i64: 1, 1>, scalar_prefetch = 0 : i64, scratch_operands = 1 : i64, tpu.core_type = #tpu.core_type<tc>, window_params = [{transform_indices = @transform_0, window_bounds = array<i64: 16, 128>}, {transform_indices = @transform_1, window_bounds = array<i64: 128, 128>}, {pipeline_mode = #tpu.pipeline_mode<synchronous>, transform_indices = @transform_2, window_bounds = array<i64: 1, 128>}, {pipeline_mode = #tpu.pipeline_mode<synchronous>, transform_indices = @transform_3, window_bounds = array<i64: 1, 128>}, {pipeline_mode = #tpu.pipeline_mode<synchronous>, transform_indices = @transform_4, window_bounds = array<i64: 1, 128>}, {transform_indices = @transform_5, window_bounds = array<i64: 16, 128>}]} {
    %c0_i32 = arith.constant 0 : i32
    %0 = arith.cmpi eq, %arg1, %c0_i32 : i32
    %1 = arith.extui %0 : i1 to i32
    %c0_i32_0 = arith.constant 0 : i32
    %2 = arith.cmpi ne, %1, %c0_i32_0 : i32
    scf.if %2 {
      %cst_10 = arith.constant 0.000000e+00 : f32
      %12 = vector.broadcast %cst_10 : f32 to vector<16x128xf32>
      %c0_11 = arith.constant 0 : index
      %c0_12 = arith.constant 0 : index
      %13 = vector.load %arg8[%c0_11, %c0_12] : memref<16x128xf32, #tpu.memory_space<vmem>>, vector<16x128xf32>
      tpu.vector_store %arg8[%c0_11, %c0_12], %12 {strides = array<i32>} : memref<16x128xf32, #tpu.memory_space<vmem>>, vector<16x128xf32>,
    } else {
    }
    %c0 = arith.constant 0 : index
    %c0_1 = arith.constant 0 : index
    %3 = vector.load %arg8[%c0, %c0_1] : memref<16x128xf32, #tpu.memory_space<vmem>>, vector<16x128xf32>
    %c0_2 = arith.constant 0 : index
    %c0_3 = arith.constant 0 : index
    %4 = vector.load %arg2[%c0_2, %c0_3] : memref<16x128xbf16, #tpu.memory_space<vmem>>, vector<16x128xbf16>
    %c0_4 = arith.constant 0 : index
    %c0_5 = arith.constant 0 : index
    %5 = vector.load %arg3[%c0_4, %c0_5] : memref<128x128xbf16, #tpu.memory_space<vmem>>, vector<128x128xbf16>
    %cst = arith.constant dense<0.000000e+00> : vector<16x128xf32>
    %6 = tpu.matmul %4, %5, %cst {dimension_numbers = #tpu.dot_dimension_numbers<[1], [0], [0], [1], [0, 0, 1, 1], [], []>} : vector<16x128xbf16>, vector<128x128xbf16>, vector<16x128xf32> -> vector<16x128xf32>
    %7 = arith.addf %3, %6 : vector<16x128xf32>
    %c0_6 = arith.constant 0 : index
    %c0_7 = arith.constant 0 : index
    %8 = vector.load %arg8[%c0_6, %c0_7] : memref<16x128xf32, #tpu.memory_space<vmem>>, vector<16x128xf32>
    tpu.vector_store %arg8[%c0_6, %c0_7], %7 {strides = array<i32>} : memref<16x128xf32, #tpu.memory_space<vmem>>, vector<16x128xf32>,
    %c0_i32_8 = arith.constant 0 : i32
    %9 = arith.cmpi eq, %arg1, %c0_i32_8 : i32
    %10 = arith.extui %9 : i1 to i32
    %c0_i32_9 = arith.constant 0 : i32
    %11 = arith.cmpi ne, %10, %c0_i32_9 : i32
    scf.if %11 {
      %c0_10 = arith.constant 0 : index
      %c0_11 = arith.constant 0 : index
      %12 = vector.load %arg8[%c0_10, %c0_11] : memref<16x128xf32, #tpu.memory_space<vmem>>, vector<16x128xf32>
      %c0_12 = arith.constant 0 : index
      %c0_13 = arith.constant 0 : index
      %13 = vector.load %arg4[%c0_12, %c0_13] : memref<1x128xf32, #tpu.memory_space<vmem>>, vector<1x128xf32>
      %14 = vector.broadcast %13 : vector<1x128xf32> to vector<16x128xf32>
      %15 = arith.addf %12, %14 : vector<16x128xf32>
      %cst_14 = arith.constant dense<0.000000e+00> : vector<16xf32>
      %16 = vector.multi_reduction <add>, %15, %cst_14 [1] : vector<16x128xf32> to vector<16xf32>
      %17 = vector.shape_cast %16 : vector<16xf32> to vector<16x1xf32>
      %cst_15 = arith.constant 1.280000e+02 : f32
      %18 = vector.broadcast %cst_15 : f32 to vector<16x1xf32>
      %19 = arith.divf %17, %18 : vector<16x1xf32>
      %20 = vector.broadcast %19 : vector<16x1xf32> to vector<16x128xf32>
      %21 = arith.subf %15, %20 : vector<16x128xf32>
      %22 = arith.mulf %21, %21 : vector<16x128xf32>
      %cst_16 = arith.constant dense<0.000000e+00> : vector<16xf32>
      %23 = vector.multi_reduction <add>, %22, %cst_16 [1] : vector<16x128xf32> to vector<16xf32>
      %24 = vector.shape_cast %23 : vector<16xf32> to vector<16x1xf32>
      %cst_17 = arith.constant 1.280000e+02 : f32
      %25 = vector.broadcast %cst_17 : f32 to vector<16x1xf32>
      %26 = arith.divf %24, %25 : vector<16x1xf32>
      %cst_18 = arith.constant 9.99999974E-6 : f32
      %27 = vector.broadcast %cst_18 : f32 to vector<16x1xf32>
      %28 = arith.addf %26, %27 : vector<16x1xf32>
      %29 = math.rsqrt %28 : vector<16x1xf32>
      %30 = vector.broadcast %29 : vector<16x1xf32> to vector<16x128xf32>
      %31 = arith.mulf %21, %30 : vector<16x128xf32>
      %c0_19 = arith.constant 0 : index
      %c0_20 = arith.constant 0 : index
      %32 = vector.load %arg5[%c0_19, %c0_20] : memref<1x128xf32, #tpu.memory_space<vmem>>, vector<1x128xf32>
      %33 = vector.broadcast %32 : vector<1x128xf32> to vector<16x128xf32>
      %34 = arith.mulf %31, %33 : vector<16x128xf32>
      %c0_21 = arith.constant 0 : index
      %c0_22 = arith.constant 0 : index
      %35 = vector.load %arg6[%c0_21, %c0_22] : memref<1x128xf32, #tpu.memory_space<vmem>>, vector<1x128xf32>
      %36 = vector.broadcast %35 : vector<1x128xf32> to vector<16x128xf32>
      %37 = arith.addf %34, %36 : vector<16x128xf32>
      %cst_23 = arith.constant 0.000000e+00 : f32
      %38 = vector.broadcast %cst_23 : f32 to vector<16x128xf32>
      %39 = arith.maximumf %37, %38 : vector<16x128xf32>
      %c0_24 = arith.constant 0 : index
      %c0_25 = arith.constant 0 : index
      %40 = vector.load %arg7[%c0_24, %c0_25] : memref<16x128xf32, #tpu.memory_space<vmem>>, vector<16x128xf32>
      tpu.vector_store %arg7[%c0_24, %c0_25], %39 {strides = array<i32>} : memref<16x128xf32, #tpu.memory_space<vmem>>, vector<16x128xf32>,
    } else {
    }
    return
  }
  func.func @transform_0(%arg0: i32, %arg1: i32) -> (i32, i32) {
    %c0_i32 = arith.constant 0 : i32
    return %arg0, %arg1 : i32, i32
  }
  func.func @transform_1(%arg0: i32, %arg1: i32) -> (i32, i32) {
    %c0_i32 = arith.constant 0 : i32
    %c0_i32_0 = arith.constant 0 : i32
    return %arg1, %c0_i32 : i32, i32
  }
  func.func @transform_2(%arg0: i32, %arg1: i32) -> (i32, i32) {
    %c0_i32 = arith.constant 0 : i32
    %c0_i32_0 = arith.constant 0 : i32
    %c0_i32_1 = arith.constant 0 : i32
    return %c0_i32, %c0_i32_0 : i32, i32
  }
  func.func @transform_3(%arg0: i32, %arg1: i32) -> (i32, i32) {
    %c0_i32 = arith.constant 0 : i32
    %c0_i32_0 = arith.constant 0 : i32
    %c0_i32_1 = arith.constant 0 : i32
    return %c0_i32, %c0_i32_0 : i32, i32
  }
  func.func @transform_4(%arg0: i32, %arg1: i32) -> (i32, i32) {
    %c0_i32 = arith.constant 0 : i32
    %c0_i32_0 = arith.constant 0 : i32
    %c0_i32_1 = arith.constant 0 : i32
    return %c0_i32, %c0_i32_0 : i32, i32
  }
  func.func @transform_5(%arg0: i32, %arg1: i32) -> (i32, i32) {
    %c0_i32 = arith.constant 0 : i32
    %c0_i32_0 = arith.constant 0 : i32
    return %arg0, %c0_i32 : i32, i32
  }
}

</mosaic_0001>

<bundles_post_ra>
// kernel: tpu_custom_call.1
= control target key start
LH: loop header
LB: loop body
LE: loop exit
PB: predicated region body
PF: predicated region fallthrough
CT: control target
= control target key end

     0   :  { %10 = vsyncpa [#allocation4], 0  ;;  %s441_s0 = inlined_call_operand.hbm [shape: bf16[16,128], index: 0, kind: input, shape index: {}]   ;;  %s442_s1 = inlined_call_operand.hbm [shape: bf16[128,128], index: 1, kind: input, shape index: {}]   ;;  %s443_s2 = inlined_call_operand.vmem [shape: f32[1,128], index: 2, kind: input, shape index: {}]   ;;  %s444_s3 = inlined_call_operand.vmem [shape: f32[1,128], index: 3, kind: input, shape index: {}]   ;;  %s445_s4 = inlined_call_operand.vmem [shape: f32[1,128], index: 4, kind: input, shape index: {}]   ;;  %s446_s5 = inlined_call_operand.hbm [shape: f32[16,128], index: 5, kind: output, shape index: {}]  }
   0x1   :  { %11 = vsyncpa [#allocation7], 0 }
   0x2   :  { %12 = vsyncpa [#allocation5], 0  ;;  %s17_s20 = sshll.u32 %s441_s0, 4  ;;  %s385_s21 = smov [#allocation3]   ;;  %s18_s20 = int_to_ptr.hbm [resolvable:$true] %s17_s20 }
   0x3   :  { %s19_s22 = sshll.u32 %s385_s21, 4  ;;  %s30_s25 = sshll.u32 %s442_s1, 4  ;;  %s20_s22 = int_to_ptr.vmem [resolvable:$true] %s19_s22  ;;  %s31_s25 = int_to_ptr.hbm [resolvable:$true] %s30_s25 }
   0x4   :  { %s386_s26 = smov 64   ;;  %s387_s27 = smov 4  }
   0x5   :  { %25 = dma.hbm_to_vmem [thread:$0]  %s18_s20, 128, %s20_s22, [#allocation4], %s386_s26, %s386_s26, %s387_s27  }
   0x6   :  { %s388_s28 = smov [#allocation6]  }
   0x7   :  { %s32_s29 = sshll.u32 %s388_s28, 4  ;;  %s33_s29 = int_to_ptr.vmem [resolvable:$true] %s32_s29 }
   0x8   :  { %38 = dma.hbm_to_vmem [thread:$0]  %s31_s25, 1024, %s33_s29, [#allocation7], %s386_s26, %s386_s26, %s387_s27  }
   0x9   :  { %379 = dma.done.wait [#allocation4], 128  }
   0xa   :  { %380 = vsyncadd [#allocation4], 4294967168 }
   0xb   :  { %381 = dma.done.wait [#allocation7], 1024  }
   0xc   :  { %382 = vsyncadd [#allocation7], 4294966272  ;;  %v289_v0 = vld [vmem:[#allocation6 + $0x38] sm:$0xff]  ;;  %v288_v1 = vld [vmem:[#allocation6 + $0x30] sm:$0xff]  ;;  %v389_v14 = vmov 128.0   ;;  %s391_s11 = smov 128  }
   0xd   :  { %133 = vmatpush.bf16.msra.mxu0 %v289_v0  ;;  %v287_v2 = vld [vmem:[#allocation6 + $0x28] sm:$0xff]  ;;  %v286_v3 = vld [vmem:[#allocation6 + $0x20] sm:$0xff]  ;;  %v285_v4 = vld [vmem:[#allocation6 + $0x18] sm:$0xff]  ;;  %301 = vrcp.f32 %v389_v14  ;;  %s392_s12 = smov 8  }
   0xe   :  { %v284_v5 = vld [vmem:[#allocation6 + $0x10] sm:$0xff]  ;;  %v283_v6 = vld [vmem:[#allocation6 + $0x8] sm:$0xff]  ;;  %v282_v7 = vld [vmem:[#allocation6] sm:$0xff] }
   0xf   :  { %v281_v8 = vld [vmem:[#allocation3] sm:$0xff] }
  0x10   :  { %v298_v9 = vld [vmem:[%s443_s2] ss:$0 sm:$0xff] }
  0x11   :  { %134 = vmatpush.bf16.msra.mxu0 %v288_v1  ;;  %v299_v43 = vld [vmem:[%s444_s3] ss:$0 sm:$0xff]  ;;  %s390_s3 = smov [#allocation8]  }
  0x12   :  { %v300_v46 = vld [vmem:[%s445_s4] ss:$0 sm:$0xff]  ;;  %s229_s8 = sshll.u32 %s390_s3, 4  ;;  %s231_s4 = sshll.u32 %s446_s5, 4  ;;  %s230_s8 = int_to_ptr.vmem [resolvable:$true] %s229_s8  ;;  %s232_s4 = int_to_ptr.hbm [resolvable:$true] %s231_s4 }
  0x13   :  { %v302_v15 = vpop.eup %301 }
  0x14   :  { %v167_v16 = vmul.f32 128.0, %v302_v15  ;;  %vm171_vm0 = vweird.f32 %v302_v15 }
  0x15   :  { %135 = vmatpush.bf16.msra.mxu0 %v287_v2 }
  0x16   :  { %v168_v17 = vsub.f32 1.0, %v167_v16 }
  0x18   :  { %v169_v18 = vmul.f32 %v302_v15, %v168_v17 }
  0x19   :  { %136 = vmatpush.bf16.msra.mxu0 %v286_v3 }
  0x1a   :  { %v170_v19 = vadd.f32 %v302_v15, %v169_v18 }
  0x1c   :  { %v172_v20 = vsel %vm171_vm0, %v302_v15, %v170_v19 }
  0x1d   :  { %137 = vmatpush.bf16.msra.mxu0 %v285_v4 }
  0x21   :  { %138 = vmatpush.bf16.msra.mxu0 %v284_v5 }
  0x25   :  { %139 = vmatpush.bf16.msra.mxu0 %v283_v6 }
  0x29   :  { %140 = vmatpush.bf16.msra.mxu0 %v282_v7 }
  0x2c   :  { %141 = vmatmul.bf16.vlgmr.msra.gmra.mxu0 %v281_v8 }
  0xa9   :  { %v142_v10 = vpop.f32.mrf.mxu0 }
  0xaa   :  { %v160_v11 = vadd.f32 %v298_v9, %v142_v10 }
  0xac   :  { %162 = vadd.xlane.f32.xlu0 %v160_v11 }
  0xb1   :  { %v144_v12 = vpop.f32.mrf.mxu0 }
  0xb2   :  { %v161_v13 = vadd.f32 %v298_v9, %v144_v12 }
  0xb4   :  { %164 = vadd.xlane.f32.xlu0 %v161_v13 }
 0x11f   :  { %v163_v21 = vpop.xlane.xlu0 %162 }
 0x120   :  { %v173_v22 = vmul.f32 %v172_v20, %v163_v21 }
 0x122   :  { %v175_v23 = vsub.f32 %v160_v11, %v173_v22 }
 0x124   :  { %v177_v24 = vmul.f32 %v175_v23, %v175_v23 }
 0x126   :  { %179 = vadd.xlane.f32.xlu1 %v177_v24 }
 0x127   :  { %v165_v25 = vpop.xlane.xlu0 %164 }
 0x128   :  { %v174_v26 = vmul.f32 %v172_v20, %v165_v25 }
 0x12a   :  { %v176_v27 = vsub.f32 %v161_v13, %v174_v26 }
 0x12c   :  { %v178_v28 = vmul.f32 %v176_v27, %v176_v27 }
 0x12e   :  { %181 = vadd.xlane.f32.xlu1 %v178_v28 }
 0x199   :  { %v180_v29 = vpop.xlane.xlu1 %179 }
 0x19a   :  { %v183_v30 = vmul.f32 %v180_v29, %v172_v20 }
 0x19c   :  { %v185_v31 = vadd.f32 1e-05, %v183_v30 }
 0x19e   :  { %303 = vrsqrt.f32 %v185_v31  ;;  %vm193_vm2 = vweird.f32 %v185_v31 }
 0x1a1   :  { %v182_v32 = vpop.xlane.xlu1 %181 }
 0x1a2   :  { %v184_v33 = vmul.f32 %v182_v32, %v172_v20 }
 0x1a4   :  { %v304_v34 = vpop.eup %303  ;;  %v186_v35 = vadd.f32 1e-05, %v184_v33 }
 0x1a5   :  { %v188_v36 = vmul.f32 %v304_v34, %v185_v31  ;;  %vm194_vm1 = vweird.f32 %v304_v34 }
 0x1a6   :  { %305 = vrsqrt.f32 %v186_v35  ;;  %vm195_vm3 = vmor %vm193_vm2, %vm194_vm1  ;;  %vm203_vm5 = vweird.f32 %v186_v35 }
 0x1a7   :  { %v189_v37 = vmul.f32 %v304_v34, %v188_v36 }
 0x1a9   :  { %v190_v38 = vmul.f32 0.5, %v189_v37 }
 0x1ab   :  { %v191_v39 = vsub.f32 1.5, %v190_v38 }
 0x1ac   :  { %v306_v40 = vpop.eup %305 }
 0x1ad   :  { %v192_v41 = vmul.f32 %v304_v34, %v191_v39  ;;  %v198_v42 = vmul.f32 %v306_v40, %v186_v35  ;;  %vm204_vm4 = vweird.f32 %v306_v40 }
 0x1ae   :  { %vm205_vm6 = vmor %vm203_vm5, %vm204_vm4 }
 0x1af   :  { %v196_v44 = vsel %vm195_vm3, %v304_v34, %v192_v41  ;;  %v199_v45 = vmul.f32 %v306_v40, %v198_v42 }
 0x1b0   :  { %v207_v47 = vmul.f32 %v196_v44, %v175_v23 }
 0x1b1   :  { %v200_v48 = vmul.f32 0.5, %v199_v45 }
 0x1b2   :  { %v213_v49 = vmul.f32 %v299_v43, %v207_v47 }
 0x1b3   :  { %v201_v50 = vsub.f32 1.5, %v200_v48 }
 0x1b4   :  { %v219_v51 = vadd.f32 %v300_v46, %v213_v49 }
 0x1b5   :  { %v202_v52 = vmul.f32 %v306_v40, %v201_v50 }
 0x1b6   :  { %v221_v53 = vmax.f32 %v219_v51, 0.0 }
 0x1b7   :  { %v206_v54 = vsel %vm205_vm6, %v306_v40, %v202_v52 }
 0x1b8   :  { %v208_v55 = vmul.f32 %v206_v54, %v176_v27  ;;  %223 = vst [vmem:[#allocation8] sm:$0xff] %v221_v53 }
 0x1ba   :  { %v214_v56 = vmul.f32 %v299_v43, %v208_v55 }
 0x1bc   :  { %v220_v57 = vadd.f32 %v300_v46, %v214_v56 }
 0x1be   :  { %v222_v58 = vmax.f32 %v220_v57, 0.0 }
 0x1c0   :  { %224 = vst [vmem:[#allocation8 + $0x8] sm:$0xff] %v222_v58 }
 0x1c1   :  { %237 = dma.vmem_to_hbm [thread:$0]  %s230_s8, 256, %s232_s4, [#allocation5], %s391_s11, %s391_s11, %s392_s12  }
 0x1c2   :  { %383 = dma.done.wait [#allocation5], 256  }
 0x1c3   :  { %384 = vsyncadd [#allocation5], 4294967040 }
 0x1c4   :  { %242 = vsyncpa [#allocation4], 1 }
 0x1c5   :  { %243 = vsyncpa [#allocation7], 1 }
 0x1c6   :  { %244 = vsyncpa [#allocation5], 1 }

</bundles_post_ra>
